<compile_context>
chip_gen: v5e
topology: v5e:2x2
jax: 0.10.0
libtpu: 0.0.40
codegen_flags: <defaults>
</compile_context>

<pallas_src>
import functools

import jax
import jax.numpy as jnp
from jax import lax
from jax.experimental import pallas as pl
from jax.experimental.pallas import tpu as pltpu


def _round_up(x, m):
    return ((x + m - 1) // m) * m


def _add_norm_kernel(seed_ref, x_ref, w_ref, b_ref, gamma_ref, beta_ref, o_ref,
                     *, dropout_p, eps, d_valid):
    x = x_ref[...]                                   # (tm, Dp) f32
    w = w_ref[...]                                   # (Dp, Dp) bf16/f32 (resident)

    # layer(x): Linear(dim, dim) on the MXU, f32 accumulation.
    y = jnp.dot(x.astype(w.dtype), w, preferred_element_type=jnp.float32)
    y = y + b_ref[...]

    # Dropout: counter-based integer hash keyed on (global_row, col, seed),
    # integer-threshold keep decision (no float uniform, no stateful PRNG).
    if dropout_p > 0.0:
        keep_prob = 1.0 - dropout_p
        tm = x.shape[0]
        row = lax.broadcasted_iota(jnp.int32, y.shape, 0) + pl.program_id(0) * tm
        col = lax.broadcasted_iota(jnp.int32, y.shape, 1)
        h = row.astype(jnp.uint32) * jnp.uint32(0x9E3779B1)
        h = h ^ (col.astype(jnp.uint32) * jnp.uint32(0x85EBCA77))
        h = h + seed_ref[0].astype(jnp.uint32)
        # murmur-style 32-bit finalizer
        h = h ^ (h >> 16)
        h = h * jnp.uint32(0x7FEB352D)
        h = h ^ (h >> 15)
        h = h * jnp.uint32(0x846CA68B)
        h = h ^ (h >> 16)
        thresh = jnp.int32(int(round(keep_prob * (1 << 24))))
        keep = (h >> 8).astype(jnp.int32) < thresh
        y = jnp.where(keep, y * jnp.float32(1.0 / keep_prob), jnp.float32(0.0))

    # Residual add + LayerNorm over the true feature width (padded cols are 0).
    z = x + y
    d_pad = z.shape[-1]
    if d_pad == d_valid:
        mean = jnp.mean(z, axis=-1, keepdims=True)
        zc = z - mean
        var = jnp.mean(zc * zc, axis=-1, keepdims=True)
    else:
        inv_d = jnp.float32(1.0 / d_valid)
        mean = jnp.sum(z, axis=-1, keepdims=True) * inv_d
        col = lax.broadcasted_iota(jnp.int32, z.shape, 1)
        zc = jnp.where(col < d_valid, z - mean, jnp.float32(0.0))
        var = jnp.sum(zc * zc, axis=-1, keepdims=True) * inv_d
    rstd = lax.rsqrt(var + eps)
    o_ref[...] = zc * rstd * gamma_ref[...] + beta_ref[...]


def add_norm_wrapper(x, w, b, gamma, beta, seed, *, dropout_p=0.1, eps=1e-6,
                     matmul_dtype=jnp.bfloat16, tile_m=256):
    """x: (B, S, D) f32.  layer(x) = x @ w + b with w: (D, D), b: (D,)."""
    B, S, D = x.shape
    M = B * S

    # Lane-dense feature dim (multiple of 128) and sublane-aligned row tile.
    d_pad = _round_up(D, 128)
    tm = _round_up(min(tile_m, _round_up(M, 8)), 8)
    m_pad = _round_up(M, tm)

    x2 = x.reshape(M, D)
    if (m_pad, d_pad) != (M, D):
        x2 = jnp.pad(x2, ((0, m_pad - M), (0, d_pad - D)))
    w_p = jnp.pad(w, ((0, d_pad - D), (0, d_pad - D))) if d_pad != D else w
    w_p = w_p.astype(matmul_dtype)
    b_p = (jnp.pad(b, (0, d_pad - D)) if d_pad != D else b).reshape(1, d_pad)
    g_p = (jnp.pad(gamma, (0, d_pad - D)) if d_pad != D else gamma).reshape(1, d_pad)
    be_p = (jnp.pad(beta, (0, d_pad - D)) if d_pad != D else beta).reshape(1, d_pad)
    seed_arr = jnp.asarray([seed], dtype=jnp.int32)

    kernel = functools.partial(_add_norm_kernel, dropout_p=float(dropout_p),
                               eps=float(eps), d_valid=D)

    grid = (m_pad // tm,)
    grid_spec = pltpu.PrefetchScalarGridSpec(
        num_scalar_prefetch=1,               # seed -> SMEM
        grid=grid,
        in_specs=[
            pl.BlockSpec((tm, d_pad), lambda i, s: (i, 0)),      # x tile
            pl.BlockSpec((d_pad, d_pad), lambda i, s: (0, 0)),   # weight (resident)
            pl.BlockSpec((1, d_pad), lambda i, s: (0, 0)),       # bias
            pl.BlockSpec((1, d_pad), lambda i, s: (0, 0)),       # gamma
            pl.BlockSpec((1, d_pad), lambda i, s: (0, 0)),       # beta
        ],
        out_specs=pl.BlockSpec((tm, d_pad), lambda i, s: (i, 0)),
    )

    w_item = jnp.dtype(matmul_dtype).itemsize
    vmem_est = (4 * tm * d_pad * 4                   # x + out tiles, double-buffered
                + 2 * d_pad * d_pad * w_item         # resident weight (safety x2)
                + 6 * d_pad * 4 + (2 << 20))
    vmem_limit = int(min(max(vmem_est, 16 * 1024 * 1024), 64 * 1024 * 1024))

    cost = pl.CostEstimate(
        flops=2 * m_pad * d_pad * d_pad,
        transcendentals=m_pad,
        bytes_accessed=(2 * m_pad * d_pad * 4
                        + d_pad * d_pad * w_item + 3 * d_pad * 4),
    )

    out = pl.pallas_call(
        kernel,
        out_shape=jax.ShapeDtypeStruct((m_pad, d_pad), jnp.float32),
        grid_spec=grid_spec,
        compiler_params=pltpu.CompilerParams(
            dimension_semantics=("parallel",),
            vmem_limit_bytes=vmem_limit,
        ),
        cost_estimate=cost,
    )(seed_arr, x2, w_p, b_p, g_p, be_p)

    return out[:M, :D].reshape(B, S, D)


def _reference_no_dropout(x, w, b, gamma, beta, eps=1e-6):
    y = jnp.einsum("bsd,de->bse", x, w) + b
    z = x + y
    mean = jnp.mean(z, axis=-1, keepdims=True)
    var = jnp.mean((z - mean) ** 2, axis=-1, keepdims=True)
    return (z - mean) * lax.rsqrt(var + eps) * gamma + beta


if __name__ == "__main__":
    key = jax.random.PRNGKey(0)
    B, S, D = 2, 8, 32
    k_x, k_w, k_b = jax.random.split(key, 3)

    x = jax.random.normal(k_x, (B, S, D), dtype=jnp.float32)
    # deterministic "layer" parameters (Linear(dim, dim))
    w = jax.random.normal(k_w, (D, D), dtype=jnp.float32) * (1.0 / jnp.sqrt(D))
    b = jax.random.normal(k_b, (D,), dtype=jnp.float32) * 0.01
    # LayerNorm affine params (PyTorch init: weight=1, bias=0)
    gamma = jnp.ones((D,), dtype=jnp.float32)
    beta = jnp.zeros((D,), dtype=jnp.float32)

    # Correctness: f32 matmul path, dropout disabled, vs pure-JAX reference.
    out_f32 = add_norm_wrapper(x, w, b, gamma, beta, seed=0, dropout_p=0.0,
                               matmul_dtype=jnp.float32)
    ref = _reference_no_dropout(x, w, b, gamma, beta)
    assert jnp.allclose(out_f32, ref, atol=1e-5, rtol=1e-5), "mismatch vs reference"

    # Production path: bf16 MXU operands + in-kernel integer-threshold dropout.
    out = add_norm_wrapper(x, w, b, gamma, beta, seed=1234, dropout_p=0.1,
                           matmul_dtype=jnp.bfloat16)
    jax.block_until_ready(out)
    assert out.shape == x.shape
    assert bool(jnp.all(jnp.isfinite(out)))
    print("KERNEL_OK")
</pallas_src>

<mosaic_0001>
module attributes {stable_mosaic.version = 11 : i64} {
  func.func @_add_norm_kernel(%arg0: i32, %arg1: memref<1xi32, #tpu.memory_space<smem>>, %arg2: memref<16x128xf32, #tpu.memory_space<vmem>>, %arg3: memref<128x128xf32, #tpu.memory_space<vmem>>, %arg4: memref<1x128xf32, #tpu.memory_space<vmem>>, %arg5: memref<1x128xf32, #tpu.memory_space<vmem>>, %arg6: memref<1x128xf32, #tpu.memory_space<vmem>>, %arg7: memref<16x128xf32, #tpu.memory_space<vmem>>) attributes {dimension_semantics = [#tpu.dimension_semantics<parallel>], iteration_bounds = array<i64: 1>, scalar_prefetch = 1 : i64, scratch_operands = 0 : i64, tpu.core_type = #tpu.core_type<tc>, window_params = [{transform_indices = @transform_0, window_bounds = array<i64: 16, 128>}, {pipeline_mode = #tpu.pipeline_mode<synchronous>, transform_indices = @transform_1, window_bounds = array<i64: 128, 128>}, {pipeline_mode = #tpu.pipeline_mode<synchronous>, transform_indices = @transform_2, window_bounds = array<i64: 1, 128>}, {pipeline_mode = #tpu.pipeline_mode<synchronous>, transform_indices = @transform_3, window_bounds = array<i64: 1, 128>}, {pipeline_mode = #tpu.pipeline_mode<synchronous>, transform_indices = @transform_4, window_bounds = array<i64: 1, 128>}, {transform_indices = @transform_5, window_bounds = array<i64: 16, 128>}]} {
    %c0 = arith.constant 0 : index
    %c0_0 = arith.constant 0 : index
    %0 = vector.load %arg2[%c0, %c0_0] : memref<16x128xf32, #tpu.memory_space<vmem>>, vector<16x128xf32>
    %c0_1 = arith.constant 0 : index
    %c0_2 = arith.constant 0 : index
    %1 = vector.load %arg3[%c0_1, %c0_2] : memref<128x128xf32, #tpu.memory_space<vmem>>, vector<128x128xf32>
    %cst = arith.constant dense<0.000000e+00> : vector<16x128xf32>
    %2 = tpu.matmul %0, %1, %cst {dimension_numbers = #tpu.dot_dimension_numbers<[1], [0], [0], [1], [0, 0, 1, 1], [], []>} : vector<16x128xf32>, vector<128x128xf32>, vector<16x128xf32> -> vector<16x128xf32>
    %c0_3 = arith.constant 0 : index
    %c0_4 = arith.constant 0 : index
    %3 = vector.load %arg4[%c0_3, %c0_4] : memref<1x128xf32, #tpu.memory_space<vmem>>, vector<1x128xf32>
    %4 = vector.broadcast %3 : vector<1x128xf32> to vector<16x128xf32>
    %5 = arith.addf %2, %4 : vector<16x128xf32>
    %6 = arith.addf %0, %5 : vector<16x128xf32>
    %cst_5 = arith.constant dense<0.000000e+00> : vector<16xf32>
    %7 = vector.multi_reduction <add>, %6, %cst_5 [1] : vector<16x128xf32> to vector<16xf32>
    %8 = vector.shape_cast %7 : vector<16xf32> to vector<16x1xf32>
    %cst_6 = arith.constant 3.125000e-02 : f32
    %9 = vector.broadcast %cst_6 : f32 to vector<16x1xf32>
    %10 = arith.mulf %8, %9 : vector<16x1xf32>
    %11 = tpu.iota {dimensions = array<i32: 1>} : vector<16x128xi32>
    %c32_i32 = arith.constant 32 : i32
    %12 = vector.broadcast %c32_i32 : i32 to vector<16x128xi32>
    %13 = arith.cmpi slt, %11, %12 : vector<16x128xi32>
    %14 = vector.broadcast %10 : vector<16x1xf32> to vector<16x128xf32>
    %15 = arith.subf %6, %14 : vector<16x128xf32>
    %cst_7 = arith.constant 0.000000e+00 : f32
    %16 = vector.broadcast %cst_7 : f32 to vector<16x128xf32>
    %17 = arith.select %13, %15, %16 : vector<16x128xi1>, vector<16x128xf32>
    %18 = arith.mulf %17, %17 : vector<16x128xf32>
    %cst_8 = arith.constant dense<0.000000e+00> : vector<16xf32>
    %19 = vector.multi_reduction <add>, %18, %cst_8 [1] : vector<16x128xf32> to vector<16xf32>
    %20 = vector.shape_cast %19 : vector<16xf32> to vector<16x1xf32>
    %cst_9 = arith.constant 3.125000e-02 : f32
    %21 = vector.broadcast %cst_9 : f32 to vector<16x1xf32>
    %22 = arith.mulf %20, %21 : vector<16x1xf32>
    %cst_10 = arith.constant 9.99999997E-7 : f32
    %23 = vector.broadcast %cst_10 : f32 to vector<16x1xf32>
    %24 = arith.addf %22, %23 : vector<16x1xf32>
    %25 = math.rsqrt %24 : vector<16x1xf32>
    %26 = vector.broadcast %25 : vector<16x1xf32> to vector<16x128xf32>
    %27 = arith.mulf %17, %26 : vector<16x128xf32>
    %c0_11 = arith.constant 0 : index
    %c0_12 = arith.constant 0 : index
    %28 = vector.load %arg5[%c0_11, %c0_12] : memref<1x128xf32, #tpu.memory_space<vmem>>, vector<1x128xf32>
    %29 = vector.broadcast %28 : vector<1x128xf32> to vector<16x128xf32>
    %30 = arith.mulf %27, %29 : vector<16x128xf32>
    %c0_13 = arith.constant 0 : index
    %c0_14 = arith.constant 0 : index
    %31 = vector.load %arg6[%c0_13, %c0_14] : memref<1x128xf32, #tpu.memory_space<vmem>>, vector<1x128xf32>
    %32 = vector.broadcast %31 : vector<1x128xf32> to vector<16x128xf32>
    %33 = arith.addf %30, %32 : vector<16x128xf32>
    %c0_15 = arith.constant 0 : index
    %c0_16 = arith.constant 0 : index
    %34 = vector.load %arg7[%c0_15, %c0_16] : memref<16x128xf32, #tpu.memory_space<vmem>>, vector<16x128xf32>
    tpu.vector_store %arg7[%c0_15, %c0_16], %33 {strides = array<i32>} : memref<16x128xf32, #tpu.memory_space<vmem>>, vector<16x128xf32>,
    return
  }
  func.func @transform_0(%arg0: i32, %arg1: memref<1xi32, #tpu.memory_space<smem>>) -> (i32, i32) {
    %c0_i32 = arith.constant 0 : i32
    %c0_i32_0 = arith.constant 0 : i32
    return %arg0, %c0_i32 : i32, i32
  }
  func.func @transform_1(%arg0: i32, %arg1: memref<1xi32, #tpu.memory_space<smem>>) -> (i32, i32) {
    %c0_i32 = arith.constant 0 : i32
    %c0_i32_0 = arith.constant 0 : i32
    %c0_i32_1 = arith.constant 0 : i32
    return %c0_i32, %c0_i32_0 : i32, i32
  }
  func.func @transform_2(%arg0: i32, %arg1: memref<1xi32, #tpu.memory_space<smem>>) -> (i32, i32) {
    %c0_i32 = arith.constant 0 : i32
    %c0_i32_0 = arith.constant 0 : i32
    %c0_i32_1 = arith.constant 0 : i32
    return %c0_i32, %c0_i32_0 : i32, i32
  }
  func.func @transform_3(%arg0: i32, %arg1: memref<1xi32, #tpu.memory_space<smem>>) -> (i32, i32) {
    %c0_i32 = arith.constant 0 : i32
    %c0_i32_0 = arith.constant 0 : i32
    %c0_i32_1 = arith.constant 0 : i32
    return %c0_i32, %c0_i32_0 : i32, i32
  }
  func.func @transform_4(%arg0: i32, %arg1: memref<1xi32, #tpu.memory_space<smem>>) -> (i32, i32) {
    %c0_i32 = arith.constant 0 : i32
    %c0_i32_0 = arith.constant 0 : i32
    %c0_i32_1 = arith.constant 0 : i32
    return %c0_i32, %c0_i32_0 : i32, i32
  }
  func.func @transform_5(%arg0: i32, %arg1: memref<1xi32, #tpu.memory_space<smem>>) -> (i32, i32) {
    %c0_i32 = arith.constant 0 : i32
    %c0_i32_0 = arith.constant 0 : i32
    return %arg0, %c0_i32 : i32, i32
  }
}

</mosaic_0001>

<bundles_post_ra>
// kernel: tpu_custom_call.1
= control target key start
LH: loop header
LB: loop body
LE: loop exit
PB: predicated region body
PF: predicated region fallthrough
CT: control target
= control target key end

     0   :  { %12 = vsyncpa [#allocation5], 0  ;;  %s354_s0 = inlined_call_operand.<no memory space> [shape: s32[1], index: 0, kind: input, shape index: {}]   ;;  %s355_s1 = inlined_call_operand.hbm [shape: f32[16,128], index: 1, kind: input, shape index: {}]   ;;  %s356_s2 = inlined_call_operand.hbm [shape: f32[128,128], index: 2, kind: input, shape index: {}]   ;;  %s357_s3 = inlined_call_operand.vmem [shape: f32[1,128], index: 3, kind: input, shape index: {}]   ;;  %s358_s4 = inlined_call_operand.vmem [shape: f32[1,128], index: 4, kind: input, shape index: {}]   ;;  %s359_s5 = inlined_call_operand.vmem [shape: f32[1,128], index: 5, kind: input, shape index: {}]   ;;  %s360_s6 = inlined_call_operand.hbm [shape: f32[16,128], index: 6, kind: output, shape index: {}]  }
   0x1   :  { %13 = vsyncpa [#allocation8], 0 }
   0x2   :  { %14 = vsyncpa [#allocation6], 0  ;;  %s19_s22 = sshll.u32 %s355_s1, 4  ;;  %s287_s23 = smov [#allocation4]   ;;  %s20_s22 = int_to_ptr.hbm [resolvable:$true] %s19_s22 }
   0x3   :  { %s21_s24 = sshll.u32 %s287_s23, 4  ;;  %s32_s27 = sshll.u32 %s356_s2, 4  ;;  %s22_s24 = int_to_ptr.vmem [resolvable:$true] %s21_s24  ;;  %s33_s27 = int_to_ptr.hbm [resolvable:$true] %s32_s27 }
   0x4   :  { %s288_s28 = smov 128   ;;  %s289_s29 = smov 8  }
   0x5   :  { %27 = dma.hbm_to_vmem [thread:$0]  %s20_s22, 256, %s22_s24, [#allocation5], %s288_s28, %s288_s28, %s289_s29  }
   0x6   :  { %s290_s30 = smov [#allocation7]  }
   0x7   :  { %s34_s7 = sshll.u32 %s290_s30, 4  ;;  %s35_s7 = int_to_ptr.vmem [resolvable:$true] %s34_s7 }
   0x8   :  { %40 = dma.hbm_to_vmem [thread:$0]  %s33_s27, 2048, %s35_s7, [#allocation8], %s288_s28, %s288_s28, %s289_s29  }
   0x9   :  { %281 = dma.done.wait [#allocation5], 256  }
   0xa   :  { %282 = vsyncadd [#allocation5], 4294967040 }
   0xb   :  { %283 = dma.done.wait [#allocation8], 2048  }
   0xc   :  { %284 = vsyncadd [#allocation8], 4294965248  ;;  %v72_v0 = vld [vmem:[#allocation7 + $0x78] sm:$0xff]  ;;  %v71_v1 = vld [vmem:[#allocation7 + $0x70] sm:$0xff]  ;;  %v108_v25 = vlaneseq  ;;  %s291_s11 = smov [#allocation9]   ;;  %s167_s14 = sshll.u32 %s360_s6, 4  ;;  %s168_s14 = int_to_ptr.hbm [resolvable:$true] %s167_s14 }
   0xd   :  { %77 = vmatpush.msra.mxu0 %v72_v0  ;;  %181 = vmatpush.msra.mxu1 %v72_v0  ;;  %v70_v2 = vld [vmem:[#allocation7 + $0x68] sm:$0xff]  ;;  %v69_v3 = vld [vmem:[#allocation7 + $0x60] sm:$0xff]  ;;  %v68_v4 = vld [vmem:[#allocation7 + $0x58] sm:$0xff] }
   0xe   :  { %v67_v5 = vld [vmem:[#allocation7 + $0x50] sm:$0xff]  ;;  %v66_v6 = vld [vmem:[#allocation7 + $0x48] sm:$0xff]  ;;  %v65_v7 = vld [vmem:[#allocation7 + $0x40] sm:$0xff]  ;;  %v109_v26 = vand.u32 127, %v108_v25 }
   0xf   :  { %78 = vmatpush.msra.mxu0 %v71_v1  ;;  %182 = vmatpush.msra.mxu1 %v71_v1  ;;  %v64_v8 = vld [vmem:[#allocation7 + $0x38] sm:$0xff]  ;;  %v63_v9 = vld [vmem:[#allocation7 + $0x30] sm:$0xff]  ;;  %v62_v10 = vld [vmem:[#allocation7 + $0x28] sm:$0xff] }
  0x10   :  { %v61_v11 = vld [vmem:[#allocation7 + $0x20] sm:$0xff]  ;;  %v60_v12 = vld [vmem:[#allocation7 + $0x18] sm:$0xff]  ;;  %v59_v13 = vld [vmem:[#allocation7 + $0x10] sm:$0xff]  ;;  %vm110_vm0 = vcmp.lt.s32.totalorder %v109_v26, 32 }
  0x11   :  { %79 = vmatpush.msra.mxu0 %v70_v2  ;;  %183 = vmatpush.msra.mxu1 %v70_v2  ;;  %v58_v14 = vld [vmem:[#allocation7 + $0x8] sm:$0xff]  ;;  %v57_v15 = vld [vmem:[#allocation7] sm:$0xff]  ;;  %v55_v16 = vld [vmem:[#allocation4] sm:$0xff] }
  0x12   :  { %v56_v17 = vld [vmem:[#allocation4 + $0x8] sm:$0xff]  ;;  %v202_v18 = vld [vmem:[%s357_s3] ss:$0 sm:$0xff] }
  0x13   :  { %80 = vmatpush.msra.mxu0 %v69_v3  ;;  %184 = vmatpush.msra.mxu1 %v69_v3  ;;  %v203_v51 = vld [vmem:[%s358_s4] ss:$0 sm:$0xff]  ;;  %s165_s4 = sshll.u32 %s291_s11, 4  ;;  %s166_s4 = int_to_ptr.vmem [resolvable:$true] %s165_s4 }
  0x14   :  { %v204_v55 = vld [vmem:[%s359_s5] ss:$0 sm:$0xff] }
  0x15   :  { %81 = vmatpush.msra.mxu0 %v68_v4  ;;  %185 = vmatpush.msra.mxu1 %v68_v4 }
  0x17   :  { %82 = vmatpush.msra.mxu0 %v67_v5  ;;  %186 = vmatpush.msra.mxu1 %v67_v5 }
  0x19   :  { %83 = vmatpush.msra.mxu0 %v66_v6  ;;  %187 = vmatpush.msra.mxu1 %v66_v6 }
  0x1b   :  { %84 = vmatpush.msra.mxu0 %v65_v7  ;;  %188 = vmatpush.msra.mxu1 %v65_v7 }
  0x1d   :  { %85 = vmatpush.msra.mxu0 %v64_v8  ;;  %189 = vmatpush.msra.mxu1 %v64_v8 }
  0x1f   :  { %86 = vmatpush.msra.mxu0 %v63_v9  ;;  %190 = vmatpush.msra.mxu1 %v63_v9 }
  0x21   :  { %87 = vmatpush.msra.mxu0 %v62_v10  ;;  %191 = vmatpush.msra.mxu1 %v62_v10 }
  0x23   :  { %88 = vmatpush.msra.mxu0 %v61_v11  ;;  %192 = vmatpush.msra.mxu1 %v61_v11 }
  0x25   :  { %89 = vmatpush.msra.mxu0 %v60_v12  ;;  %193 = vmatpush.msra.mxu1 %v60_v12 }
  0x27   :  { %90 = vmatpush.msra.mxu0 %v59_v13  ;;  %194 = vmatpush.msra.mxu1 %v59_v13 }
  0x29   :  { %91 = vmatpush.msra.mxu0 %v58_v14  ;;  %195 = vmatpush.msra.mxu1 %v58_v14 }
  0x2b   :  { %92 = vmatpush.msra.mxu0 %v57_v15  ;;  %196 = vmatpush.msra.mxu1 %v57_v15 }
  0x2c   :  { %93 = vmatmul.f32.vlgmr.msra.gmra.mxu0 %v55_v16  ;;  %96 = vmatmul.f32.vlgmr.msra.gmra.mxu1 %v56_v17 }
  0xa9   :  { %v94_v19 = vpop.f32.mrf.mxu0  ;;  %v97_v21 = vpop.f32.mrf.mxu1 }
  0xaa   :  { %v95_v20 = vadd.f32 %v202_v18, %v94_v19  ;;  %v98_v23 = vadd.f32 %v202_v18, %v97_v21 }
  0xac   :  { %v100_v22 = vadd.f32 %v95_v20, %v55_v16  ;;  %v101_v24 = vadd.f32 %v98_v23, %v56_v17 }
  0xae   :  { %102 = vadd.xlane.f32.xlu0 %v100_v22 }
  0xb6   :  { %104 = vadd.xlane.f32.xlu0 %v101_v24 }
 0x121   :  { %v103_v27 = vpop.xlane.xlu0 %102 }
 0x122   :  { %v106_v28 = vmul.f32 0.03125, %v103_v27 }
 0x124   :  { %v111_v29 = vsub.f32 %v100_v22, %v106_v28 }
 0x126   :  { %v113_v30 = vsel %vm110_vm0, %v111_v29, 0.0 }
 0x127   :  { %v115_v31 = vmul.f32 %v113_v30, %v113_v30 }
 0x129   :  { %117 = vadd.xlane.f32.xlu1 %v115_v31  ;;  %v105_v32 = vpop.xlane.xlu0 %104 }
 0x12a   :  { %v107_v33 = vmul.f32 0.03125, %v105_v32 }
 0x12c   :  { %v112_v34 = vsub.f32 %v101_v24, %v107_v33 }
 0x12e   :  { %v114_v35 = vsel %vm110_vm0, %v112_v34, 0.0 }
 0x12f   :  { %v116_v36 = vmul.f32 %v114_v35, %v114_v35 }
 0x131   :  { %119 = vadd.xlane.f32.xlu1 %v116_v36 }
 0x19c   :  { %v118_v37 = vpop.xlane.xlu1 %117 }
 0x19d   :  { %v121_v38 = vmul.f32 0.03125, %v118_v37 }
 0x19f   :  { %v123_v39 = vadd.f32 1e-06, %v121_v38 }
 0x1a1   :  { %205 = vrsqrt.f32 %v123_v39  ;;  %vm131_vm2 = vweird.f32 %v123_v39 }
 0x1a4   :  { %v120_v40 = vpop.xlane.xlu1 %119 }
 0x1a5   :  { %v122_v41 = vmul.f32 0.03125, %v120_v40 }
 0x1a7   :  { %v206_v42 = vpop.eup %205  ;;  %v124_v43 = vadd.f32 1e-06, %v122_v41 }
 0x1a8   :  { %v126_v44 = vmul.f32 %v206_v42, %v123_v39  ;;  %vm132_vm1 = vweird.f32 %v206_v42 }
 0x1a9   :  { %207 = vrsqrt.f32 %v124_v43  ;;  %vm133_vm3 = vmor %vm131_vm2, %vm132_vm1  ;;  %vm141_vm5 = vweird.f32 %v124_v43 }
 0x1aa   :  { %v127_v45 = vmul.f32 %v206_v42, %v126_v44 }
 0x1ac   :  { %v128_v46 = vmul.f32 0.5, %v127_v45 }
 0x1ae   :  { %v129_v47 = vsub.f32 1.5, %v128_v46 }
 0x1af   :  { %v208_v48 = vpop.eup %207 }
 0x1b0   :  { %v130_v49 = vmul.f32 %v206_v42, %v129_v47  ;;  %v136_v50 = vmul.f32 %v208_v48, %v124_v43  ;;  %vm142_vm4 = vweird.f32 %v208_v48 }
 0x1b1   :  { %vm143_vm6 = vmor %vm141_vm5, %vm142_vm4 }
 0x1b2   :  { %v134_v52 = vsel %vm133_vm3, %v206_v42, %v130_v49  ;;  %v137_v53 = vmul.f32 %v208_v48, %v136_v50 }
 0x1b3   :  { %v145_v54 = vmul.f32 %v134_v52, %v113_v30 }
 0x1b4   :  { %v138_v56 = vmul.f32 0.5, %v137_v53 }
 0x1b5   :  { %v151_v57 = vmul.f32 %v203_v51, %v145_v54 }
 0x1b6   :  { %v139_v58 = vsub.f32 1.5, %v138_v56 }
 0x1b7   :  { %v157_v59 = vadd.f32 %v204_v55, %v151_v57 }
 0x1b8   :  { %v140_v60 = vmul.f32 %v208_v48, %v139_v58 }
 0x1b9   :  { %159 = vst [vmem:[#allocation9] sm:$0xff] %v157_v59 }
 0x1ba   :  { %v144_v61 = vsel %vm143_vm6, %v208_v48, %v140_v60 }
 0x1bb   :  { %v146_v62 = vmul.f32 %v144_v61, %v114_v35 }
 0x1bd   :  { %v152_v63 = vmul.f32 %v203_v51, %v146_v62 }
 0x1bf   :  { %v158_v0 = vadd.f32 %v204_v55, %v152_v63 }
 0x1c1   :  { %160 = vst [vmem:[#allocation9 + $0x8] sm:$0xff] %v158_v0 }
 0x1c2   :  { %173 = dma.vmem_to_hbm [thread:$0]  %s166_s4, 256, %s168_s14, [#allocation6], %s288_s28, %s288_s28, %s289_s29  }
 0x1c3   :  { %285 = dma.done.wait [#allocation6], 256  }
 0x1c4   :  { %286 = vsyncadd [#allocation6], 4294967040 }
 0x1c5   :  { %178 = vsyncpa [#allocation5], 1 }
 0x1c6   :  { %179 = vsyncpa [#allocation8], 1 }
 0x1c7   :  { %180 = vsyncpa [#allocation6], 1 }

</bundles_post_ra>
